<compile_context>
chip_gen: v5e
topology: v5e:2x2
jax: 0.10.0
libtpu: 0.0.40
codegen_flags: <defaults>
</compile_context>

<pallas_src>
import jax
import jax.numpy as jnp
from jax.experimental import pallas as pl
from jax.experimental.pallas import tpu as pltpu


_LANE = 128
_MAX_LANE_TILE = 512           # time-axis tile (multiple of 128)
_MAX_ROW_TILE = 512            # row-axis tile -> <=1 MiB per f32 block
_SUBLANE_PACK = {4: 8, 2: 16, 1: 32}   # itemsize -> sublane packing
_TINY_BYTES = 1 << 16          # below this, a kernel launch is pure overhead


# ----------------------------- Pallas kernel --------------------------------
def chomp1d_kernel(x_ref, o_ref):
    # Tiled path: in/out blocks are identical -> the slice below is a static
    # full slice (no-op) and this is a plain dense copy.
    # Tiny-T_out path: the input block carries the chomped tail -> static
    # prefix slice along the lane (time) axis, then a dense store.
    o_ref[...] = x_ref[:, : o_ref.shape[-1]]


# ----------------------------- pallas_call wrapper ---------------------------
def chomp1d_pallas(x, chomp_size):
    """x: (B, C, T) -> (B, C, T - chomp_size) via a tiled Pallas copy."""
    B, C, T = x.shape
    T_out = T - chomp_size
    assert T_out > 0, "chomp_size must be smaller than the time dimension"

    R = B * C
    x2 = x.reshape(R, T)            # rows on sublanes, time on lanes
    itemsize = jnp.dtype(x.dtype).itemsize
    sub = _SUBLANE_PACK.get(itemsize, 8)

    # Row (sublane) tile: full R when it fits, else a dtype-aligned tile.
    if R <= _MAX_ROW_TILE:
        r_tile = R
    else:
        r_tile = (_MAX_ROW_TILE // sub) * sub   # 512 is a multiple of 8/16/32

    if T_out >= _LANE:
        # Lane-dense tiles (multiple of 128, <= T_out): prefix-only input
        # windows -> the chomped tail is never read from HBM; only the last
        # time tile uses masked partial stores.
        t_tile = min(_MAX_LANE_TILE, (T_out // _LANE) * _LANE)
        in_block = (r_tile, t_tile)
        out_block = (r_tile, t_tile)
        read_cols = T_out
    else:
        # Tiny time axis: full-width blocks (block == full array dim, so the
        # (8,128) divisibility gate does not apply); prefix slice in-kernel.
        t_tile = T_out
        in_block = (r_tile, T)
        out_block = (r_tile, T_out)
        read_cols = T

    grid = (pl.cdiv(R, r_tile), pl.cdiv(T_out, t_tile))

    # Advisory cost: zero FLOPs, reads only what the BlockSpecs actually DMA.
    cost = pl.CostEstimate(
        flops=0,
        transcendentals=0,
        bytes_accessed=R * (read_cols + T_out) * itemsize,
    )

    out2 = pl.pallas_call(
        chomp1d_kernel,
        out_shape=jax.ShapeDtypeStruct((R, T_out), x.dtype),
        grid=grid,
        in_specs=[pl.BlockSpec(in_block, lambda i, j: (i, j))],
        out_specs=pl.BlockSpec(out_block, lambda i, j: (i, j)),
        compiler_params=pltpu.CompilerParams(
            dimension_semantics=("parallel", "arbitrary")),
        cost_estimate=cost,
    )(x2)

    return out2.reshape(B, C, T_out)


# ----------------------------- dispatching wrapper ----------------------------
def chomp1d(x, chomp_size, use_pallas=None):
    """PyTorch-Chomp1d-equivalent: x[:, :, :-chomp_size] (contiguous).

    use_pallas=None auto-dispatches: tiny inputs use a plain JAX slice (which
    XLA fuses into the consumer for free); larger inputs use the Pallas kernel.
    """
    assert chomp_size > 0, "chomp_size must be positive"
    B, C, T = x.shape
    T_out = T - chomp_size
    assert T_out > 0, "chomp_size must be smaller than the time dimension"

    if use_pallas is None:
        use_pallas = x.size * jnp.dtype(x.dtype).itemsize >= _TINY_BYTES
    if not use_pallas:
        return x[:, :, :T_out]
    return chomp1d_pallas(x, chomp_size)


# ----------------------------- reference (pure JAX) ---------------------------
def reference_chomp1d(x, chomp_size):
    return x[:, :, : x.shape[-1] - chomp_size]


# ----------------------------- main -------------------------------------------
if __name__ == "__main__":
    key = jax.random.PRNGKey(0)

    # Primary demo shape (small TCN block input): exercises the tiny-T_out path.
    B, C, T = 2, 4, 16
    CHOMP = 2
    x = jax.random.normal(key, (B, C, T), dtype=jnp.float32)

    out = chomp1d(x, CHOMP, use_pallas=True)        # force the Pallas kernel
    out = jax.block_until_ready(out)
    ref = reference_chomp1d(x, CHOMP)
    assert out.shape == (B, C, T - CHOMP), f"bad shape {out.shape}"
    assert jnp.array_equal(out, ref), "mismatch vs reference slice (small)"

    # Auto-dispatch path for the same tiny input (plain slice, no kernel).
    out_auto = jax.block_until_ready(chomp1d(x, CHOMP))
    assert jnp.array_equal(out_auto, ref), "mismatch vs reference slice (auto)"

    # Exercise the tiled, lane-dense, prefix-only-read path:
    # R = 16 rows, T_out = 770 -> two 512-wide lane tiles (last one masked).
    B2, C2, T2, CHOMP2 = 2, 8, 800, 30
    x2 = jax.random.normal(jax.random.PRNGKey(0), (B2, C2, T2), dtype=jnp.bfloat16)
    out2 = jax.block_until_ready(chomp1d(x2, CHOMP2, use_pallas=True))
    ref2 = reference_chomp1d(x2, CHOMP2)
    assert out2.shape == (B2, C2, T2 - CHOMP2), f"bad shape {out2.shape}"
    assert jnp.array_equal(out2, ref2), "mismatch vs reference slice (tiled)"

    print("KERNEL_OK")
</pallas_src>

<mosaic_0001>
module attributes {stable_mosaic.version = 11 : i64} {
  func.func @chomp1d_kernel(%arg0: i32, %arg1: i32, %arg2: memref<8x16xf32, #tpu.memory_space<vmem>>, %arg3: memref<8x14xf32, #tpu.memory_space<vmem>>) attributes {dimension_semantics = [#tpu.dimension_semantics<parallel>, #tpu.dimension_semantics<arbitrary>], iteration_bounds = array<i64: 1, 1>, scalar_prefetch = 0 : i64, scratch_operands = 0 : i64, tpu.core_type = #tpu.core_type<tc>, window_params = [{transform_indices = @transform_0, window_bounds = array<i64: 8, 16>}, {transform_indices = @transform_1, window_bounds = array<i64: 8, 14>}]} {
    %c0 = arith.constant 0 : index
    %c0_0 = arith.constant 0 : index
    %0 = vector.load %arg2[%c0, %c0_0] : memref<8x16xf32, #tpu.memory_space<vmem>>, vector<8x14xf32>
    %c0_1 = arith.constant 0 : index
    %c0_2 = arith.constant 0 : index
    %1 = vector.load %arg3[%c0_1, %c0_2] : memref<8x14xf32, #tpu.memory_space<vmem>>, vector<8x14xf32>
    tpu.vector_store %arg3[%c0_1, %c0_2], %0 {strides = array<i32>} : memref<8x14xf32, #tpu.memory_space<vmem>>, vector<8x14xf32>,
    return
  }
  func.func @transform_0(%arg0: i32, %arg1: i32) -> (i32, i32) {
    %c0_i32 = arith.constant 0 : i32
    return %arg0, %arg1 : i32, i32
  }
  func.func @transform_1(%arg0: i32, %arg1: i32) -> (i32, i32) {
    %c0_i32 = arith.constant 0 : i32
    return %arg0, %arg1 : i32, i32
  }
}

</mosaic_0001>

<bundles_post_ra>
// kernel: tpu_custom_call.1
= control target key start
LH: loop header
LB: loop body
LE: loop exit
PB: predicated region body
PF: predicated region fallthrough
CT: control target
= control target key end

     0   :  { %6 = vsyncpa [#allocation3], 0  ;;  %s115_s0 = inlined_call_operand.hbm [shape: f32[8,16], index: 0, kind: input, shape index: {}]   ;;  %s116_s1 = inlined_call_operand.hbm [shape: f32[8,14], index: 1, kind: output, shape index: {}]  }
   0x1   :  { %7 = vsyncpa [#allocation4], 0  ;;  %s13_s8 = sshll.u32 %s115_s0, 4  ;;  %s97_s9 = smov [#allocation2]   ;;  %s14_s8 = int_to_ptr.hbm [resolvable:$true] %s13_s8 }
   0x2   :  { %s15_s10 = sshll.u32 %s97_s9, 4  ;;  %s16_s10 = int_to_ptr.vmem [resolvable:$true] %s15_s10 }
   0x3   :  { %18 = dma.hbm_to_vmem [thread:$0]  %s14_s8, 128, %s16_s10, [#allocation3]  }
   0x4   :  { %93 = dma.done.wait [#allocation3], 128  }
   0x5   :  { %94 = vsyncadd [#allocation3], 4294967168  ;;  %s98_s11 = smov [#allocation5]   ;;  %s33_s15 = sshll.u32 %s116_s1, 4  ;;  %vm24_vm0 = vcmask 113664   ;;  %v23_v0 = vld [vmem:[#allocation2] sm:$0xff]  ;;  %s34_s15 = int_to_ptr.hbm [resolvable:$true] %s33_s15 }
   0x6   :  { %s31_s12 = sshll.u32 %s98_s11, 4  ;;  %25 = vst.msk [vmem:[#allocation5] sm:$0xff] %vm24_vm0, %v23_v0  ;;  %s32_s12 = int_to_ptr.vmem [resolvable:$true] %s31_s12 }
   0x7   :  { %36 = dma.vmem_to_hbm [thread:$0]  %s32_s12, 128, %s34_s15, [#allocation4]  }
   0x8   :  { %95 = dma.done.wait [#allocation4], 128  }
   0x9   :  { %96 = vsyncadd [#allocation4], 4294967168 }
   0xa   :  { %41 = vsyncpa [#allocation3], 1 }
   0xb   :  { %42 = vsyncpa [#allocation4], 1 }

</bundles_post_ra>
